<compile_context>
chip_gen: v7x
topology: tpu7x:2x2x1
jax: 0.10.0
libtpu: 0.0.40
codegen_flags: <defaults>
</compile_context>

<pallas_src>
import functools

import jax
import jax.numpy as jnp
from jax.experimental import pallas as pl
from jax.experimental.pallas import tpu as pltpu


def _cdiv(a, b):
    return -(-a // b)


def _round_up(a, m):
    return _cdiv(a, m) * m


# ----------------------------------------------------------------------------
# Fused Pallas kernel: whole TCN (all temporal blocks) + final Linear
# ----------------------------------------------------------------------------
def _fused_tcn_kernel(x_ref, mask_ref, *refs, layer_cfg, K, L, P, S, Bt,
                      cin0_pad, n_weights, compute_dtype):
    # x_ref   : (1, Bt, cin0_pad, L) input tile (channels already zero-padded)
    # mask_ref: (1, Bt*S - P) 1.0 on valid columns, 0.0 on causal-pad columns
    # refs    : (*weight_refs, out_ref, bufA, bufB)
    #   per layer: w1 (K, Cout_p, Cin_p), b1 (Cout_p,1),
    #              w2 (K, Cout_p, Cout_p), b2 (Cout_p,1),
    #              [wd (Cout_p, Cin_p), bd (Cout_p,1)]  (iff downsample)
    #   then     : fc_w (Clast_p, Out), fc_b (1, Out)
    # out_ref : (1, Bt, Out)
    # bufA/B  : VMEM scratch (c_max_pad, Bt*S); segment b lives in columns
    #           [b*S, (b+1)*S); its first P columns are the causal zero pad.
    wrefs = refs[:n_weights]
    out_ref = refs[n_weights]
    bufA = refs[n_weights + 1]
    bufB = refs[n_weights + 2]

    W = Bt * S                       # total scratch width
    Wv = W - P                       # width of the computed region [P, W)
    f32 = jnp.float32

    # Causal-pad invariant:
    #  * segment-0 pad columns [0, P) of both buffers are zeroed here each step
    #    (all rows) and never written by any store below;
    #  * pad columns of segments >= 1 receive explicit zeros from the masked
    #    activation stores each step; for the very first layer's input we also
    #    zero them (rows [0, cin0_pad)) explicitly below.
    if P > 0:
        bufA[:, 0:P] = jnp.zeros((bufA.shape[0], P), f32)
        bufB[:, 0:P] = jnp.zeros((bufB.shape[0], P), f32)
        zpad = jnp.zeros((cin0_pad, P), f32)
        for b in range(1, Bt):
            bufA[0:cin0_pad, b * S: b * S + P] = zpad

    # Scatter the input tile into per-segment valid columns.
    for b in range(Bt):
        bufA[0:cin0_pad, b * S + P: b * S + P + L] = x_ref[0, b]

    mask = mask_ref[...]             # (1, Wv)

    def dilated_conv(buf, cin_p, cout_p, w_ref, b_ref, dilation):
        # K per-tap accumulated MXU matmuls (no im2row concat copies).
        # Output column p (>= P) of the buffer reads input column p - s_k with
        # s_k = (K-1-k)*dilation <= P, so reads never cross segment boundaries.
        acc = jnp.zeros((cout_p, Wv), f32)
        for k in range(K):
            s = (K - 1 - k) * dilation
            wk = w_ref[k].astype(compute_dtype)                  # (Cout_p, Cin_p)
            xk = buf[0:cin_p, P - s: P - s + Wv].astype(compute_dtype)
            acc = acc + jnp.dot(wk, xk, preferred_element_type=f32)
        return acc + b_ref[...]                                  # bias (Cout_p,1)

    n_layers = len(layer_cfg)
    widx = 0
    cin_p = cin0_pad
    y = None
    for li, (cout_p, dilation, has_ds) in enumerate(layer_cfg):
        w1 = wrefs[widx]
        b1 = wrefs[widx + 1]
        w2 = wrefs[widx + 2]
        b2 = wrefs[widx + 3]
        widx += 4

        # conv1 -> ReLU (dropout1 = identity).  Masked store writes zeros into
        # the pad columns of segments >= 1, preserving causal zeros.
        h1 = jnp.maximum(dilated_conv(bufA, cin_p, cout_p, w1, b1, dilation),
                         0.0) * mask
        bufB[0:cout_p, P:W] = h1

        # conv2 -> ReLU (dropout2 = identity).
        h2 = jnp.maximum(dilated_conv(bufB, cout_p, cout_p, w2, b2, dilation),
                         0.0)

        # residual (1x1 downsample only when real Cin != real Cout)
        x_in = bufA[0:cin_p, P:W]                                # (Cin_p, Wv)
        if has_ds:
            wd = wrefs[widx]
            bd = wrefs[widx + 1]
            widx += 2
            res = jnp.dot(wd[...].astype(compute_dtype),
                          x_in.astype(compute_dtype),
                          preferred_element_type=f32) + bd[...]
        else:
            res = x_in
        y = jnp.maximum(h2 + res, 0.0)                           # (Cout_p, Wv)

        if li + 1 < n_layers:
            bufA[0:cout_p, P:W] = y * mask                       # next input
        cin_p = cout_p

    # Final Linear on the last time step of every segment, as one MXU matmul:
    # (Bt, Clast_p) @ (Clast_p, Out) via dot_general with lhs contracted on
    # dim 0 (no explicit transpose), then a lane-dense (Bt, Out) store.
    fc_w = wrefs[widx][...]                                      # (Clast_p, Out)
    fc_b = wrefs[widx + 1][...]                                  # (1, Out)
    last = jnp.concatenate(
        [y[:, b * S + L - 1: b * S + L] for b in range(Bt)], axis=1)  # (Clast_p, Bt)
    out = jax.lax.dot_general(
        last.astype(compute_dtype), fc_w.astype(compute_dtype),
        dimension_numbers=(((0,), (0,)), ((), ())),
        preferred_element_type=f32) + fc_b                       # (Bt, Out)
    out_ref[0] = out


# ----------------------------------------------------------------------------
# One-time weight preparation (outside the jitted forward)
# ----------------------------------------------------------------------------
def prepare_params(params, *, num_features, num_channels, forecast_horizon):
    """Pad channels to multiples of 8 and lay weights out per-tap, ONCE."""
    K = params["blocks"][0]["w1"].shape[0]
    weights = []
    cin = num_features
    for i, cout in enumerate(num_channels):
        p = params["blocks"][i]
        cin_p = _round_up(cin, 8)
        cout_p = _round_up(cout, 8)
        w1 = jnp.zeros((K, cout_p, cin_p), jnp.float32).at[:, :cout, :cin].set(p["w1"])
        b1 = jnp.zeros((cout_p, 1), jnp.float32).at[:cout].set(p["b1"])
        w2 = jnp.zeros((K, cout_p, cout_p), jnp.float32).at[:, :cout, :cout].set(p["w2"])
        b2 = jnp.zeros((cout_p, 1), jnp.float32).at[:cout].set(p["b2"])
        weights += [w1, b1, w2, b2]
        if cin != cout:
            wd = jnp.zeros((cout_p, cin_p), jnp.float32).at[:cout, :cin].set(p["wd"])
            bd = jnp.zeros((cout_p, 1), jnp.float32).at[:cout].set(p["bd"])
            weights += [wd, bd]
        cin = cout
    clast_p = _round_up(num_channels[-1], 8)
    out_dim = forecast_horizon * num_features
    fc_w = jnp.zeros((clast_p, out_dim), jnp.float32).at[:num_channels[-1]].set(
        params["fc_w_t"])
    fc_b = params["fc_b"].astype(jnp.float32)
    weights += [fc_w, fc_b]
    return tuple(weights)


# ----------------------------------------------------------------------------
# Wrapper: batch tiling, specs, and the single pallas_call
# ----------------------------------------------------------------------------
def tcn_forecast(x, weights, *, num_features, num_channels, forecast_horizon,
                 compute_dtype=jnp.float32):
    # x: (B, input_length, num_features) -- matches the PyTorch module's input.
    B, L, F = x.shape
    assert F == num_features
    K = weights[0].shape[0]
    n_layers = len(num_channels)
    P = (K - 1) * (2 ** (n_layers - 1))            # largest causal pad
    S = P + L                                      # one segment's width
    out_dim = forecast_horizon * num_features
    F_pad = _round_up(num_features, 8)
    cout_pads = [_round_up(c, 8) for c in num_channels]
    c_max_pad = max([F_pad] + cout_pads)

    # Batch tile size: fill ~256 MXU lanes (N = Bt*L), bounded by scratch VMEM;
    # keep >= 2 grid steps (both v7x TCs) when that doesn't starve the lanes.
    Bt = min(B, max(1, _cdiv(256, L)))
    while Bt > 1 and 2 * c_max_pad * Bt * S * 4 > (8 << 20):
        Bt = _cdiv(Bt, 2)
    if _cdiv(B, Bt) < 2 and B >= 2 and _cdiv(B, 2) * L >= 128:
        Bt = _cdiv(B, 2)
    G = _cdiv(B, Bt)

    layer_cfg = []
    cin = num_features
    for i, cout in enumerate(num_channels):
        layer_cfg.append((_round_up(cout, 8), 2 ** i, cin != cout))
        cin = cout

    # TODO(synk): store x channels-first upstream to drop this transpose.
    x_cl = jnp.transpose(x, (0, 2, 1)).astype(jnp.float32)       # (B, F, L)
    x_cl = jnp.pad(x_cl, ((0, G * Bt - B), (0, F_pad - F), (0, 0)))
    x_blk = x_cl.reshape(G, Bt, F_pad, L)

    W_buf = Bt * S
    Wv = W_buf - P
    # 1.0 on valid (real time-step) columns, 0.0 on causal-pad columns.
    mask = ((jnp.arange(Wv) % S) < L).astype(jnp.float32)[None, :]   # (1, Wv)

    n_weights = len(weights)
    w_bytes = sum(int(w.size) * w.dtype.itemsize for w in weights)
    approx = (2 * c_max_pad * W_buf * 4 + 2 * w_bytes
              + 2 * Bt * F_pad * L * 4 + 2 * Bt * out_dim * 4 + 2 * Wv * 4)
    vmem_limit = int(min(64 << 20, max(32 << 20, 4 * approx)))

    def _whole(arr):
        nd = arr.ndim
        return pl.BlockSpec(arr.shape, lambda g, _nd=nd: (0,) * _nd)

    in_specs = ([pl.BlockSpec((1, Bt, F_pad, L), lambda g: (g, 0, 0, 0)),
                 _whole(mask)]
                + [_whole(w) for w in weights])

    kern = functools.partial(
        _fused_tcn_kernel, layer_cfg=tuple(layer_cfg), K=K, L=L, P=P, S=S,
        Bt=Bt, cin0_pad=F_pad, n_weights=n_weights,
        compute_dtype=compute_dtype)

    out = pl.pallas_call(
        kern,
        out_shape=jax.ShapeDtypeStruct((G, Bt, out_dim), jnp.float32),
        grid=(G,),
        in_specs=in_specs,
        out_specs=pl.BlockSpec((1, Bt, out_dim), lambda g: (g, 0, 0)),
        scratch_shapes=[
            pltpu.VMEM((c_max_pad, W_buf), jnp.float32),
            pltpu.VMEM((c_max_pad, W_buf), jnp.float32),
        ],
        compiler_params=pltpu.CompilerParams(
            dimension_semantics=("parallel",),
            vmem_limit_bytes=vmem_limit),
    )(x_blk, mask, *weights)

    out = out.reshape(G * Bt, out_dim)[:B]
    return out.reshape(B, forecast_horizon, num_features)


# ----------------------------------------------------------------------------
# Deterministic parameter initialization (shapes mirror the PyTorch module)
# ----------------------------------------------------------------------------
def init_params(key, *, num_features, num_channels, kernel_size,
                forecast_horizon):
    params = {"blocks": []}
    cin = num_features
    for i, cout in enumerate(num_channels):
        kb = jax.random.fold_in(key, i)
        k1, k2, k3, k4, k5, k6 = jax.random.split(kb, 6)
        blk = dict(
            # stored as (K, Cout, Cin): blk["w1"][k, co, ci] == torch W[co, ci, k]
            w1=0.2 * jax.random.normal(k1, (kernel_size, cout, cin), jnp.float32),
            b1=0.1 * jax.random.normal(k2, (cout, 1), jnp.float32),
            w2=0.2 * jax.random.normal(k3, (kernel_size, cout, cout), jnp.float32),
            b2=0.1 * jax.random.normal(k4, (cout, 1), jnp.float32),
            wd=(0.2 * jax.random.normal(k5, (cout, cin), jnp.float32)
                if cin != cout else jnp.zeros((cout, cin), jnp.float32)),
            bd=(0.1 * jax.random.normal(k6, (cout, 1), jnp.float32)
                if cin != cout else jnp.zeros((cout, 1), jnp.float32)),
        )
        params["blocks"].append(blk)
        cin = cout
    kf1, kf2 = jax.random.split(jax.random.fold_in(key, 1000))
    out_dim = forecast_horizon * num_features
    params["fc_w_t"] = 0.2 * jax.random.normal(
        kf1, (num_channels[-1], out_dim), jnp.float32)           # W.T layout
    params["fc_b"] = 0.1 * jax.random.normal(kf2, (1, out_dim), jnp.float32)
    return params


# ----------------------------------------------------------------------------
# Pure-JAX reference (lax.conv_general_dilated, mirrors PyTorch Conv1d+Chomp)
# ----------------------------------------------------------------------------
def _ref_forward(x, params, *, num_features, num_channels, kernel_size,
                 forecast_horizon):
    h = jnp.transpose(x, (0, 2, 1)).astype(jnp.float32)
    cin = num_features
    for i, cout in enumerate(num_channels):
        d = 2 ** i
        pad = (kernel_size - 1) * d
        p = params["blocks"][i]

        def conv(inp, w_koi, b):
            w = jnp.transpose(w_koi, (1, 2, 0))                  # (Cout, Cin, K)
            y = jax.lax.conv_general_dilated(
                inp, w, window_strides=(1,), padding=[(pad, pad)],
                rhs_dilation=(d,),
                dimension_numbers=("NCH", "OIH", "NCH"))
            y = y[:, :, :-pad] if pad > 0 else y                 # Chomp1d
            return y + b[None, :, :]

        h1 = jnp.maximum(conv(h, p["w1"], p["b1"]), 0.0)
        h2 = jnp.maximum(conv(h1, p["w2"], p["b2"]), 0.0)
        res = h if cin == cout else (
            jnp.einsum("oc,bcl->bol", p["wd"], h) + p["bd"][None, :, :])
        h = jnp.maximum(h2 + res, 0.0)
        cin = cout
    last = h[:, :, -1]
    out = last @ params["fc_w_t"] + params["fc_b"]
    return out.reshape(-1, forecast_horizon, num_features)


if __name__ == "__main__":
    # small config consistent with TCNForecast(__init__) signature
    B = 2
    input_length = 16
    num_features = 4
    forecast_horizon = 3
    num_channels = [8, 16]
    kernel_size = 3
    # dropout=0.1 in the module; identity at inference.

    key = jax.random.PRNGKey(0)
    params = init_params(key, num_features=num_features,
                         num_channels=num_channels, kernel_size=kernel_size,
                         forecast_horizon=forecast_horizon)
    x = jax.random.normal(jax.random.fold_in(key, 7),
                          (B, input_length, num_features), jnp.float32)

    # One-time weight padding / per-tap re-layout (outside the jitted forward).
    weights = prepare_params(params, num_features=num_features,
                             num_channels=num_channels,
                             forecast_horizon=forecast_horizon)

    fwd = jax.jit(functools.partial(
        tcn_forecast, num_features=num_features,
        num_channels=tuple(num_channels), forecast_horizon=forecast_horizon))
    out = jax.block_until_ready(fwd(x, weights))
    assert out.shape == (B, forecast_horizon, num_features)

    ref = _ref_forward(x, params, num_features=num_features,
                       num_channels=num_channels, kernel_size=kernel_size,
                       forecast_horizon=forecast_horizon)
    assert jnp.allclose(out, ref, rtol=1e-4, atol=1e-4), \
        f"max err {jnp.max(jnp.abs(out - ref))}"

    print("KERNEL_OK")
</pallas_src>

<mosaic_0001>
module attributes {stable_mosaic.version = 11 : i64} {
  func.func @_fused_tcn_kernel(%arg0: i32, %arg1: memref<1x2x8x16xf32, #tpu.memory_space<vmem>>, %arg2: memref<1x36xf32, #tpu.memory_space<vmem>>, %arg3: memref<3x8x8xf32, #tpu.memory_space<vmem>>, %arg4: memref<8x1xf32, #tpu.memory_space<vmem>>, %arg5: memref<3x8x8xf32, #tpu.memory_space<vmem>>, %arg6: memref<8x1xf32, #tpu.memory_space<vmem>>, %arg7: memref<8x8xf32, #tpu.memory_space<vmem>>, %arg8: memref<8x1xf32, #tpu.memory_space<vmem>>, %arg9: memref<3x16x8xf32, #tpu.memory_space<vmem>>, %arg10: memref<16x1xf32, #tpu.memory_space<vmem>>, %arg11: memref<3x16x16xf32, #tpu.memory_space<vmem>>, %arg12: memref<16x1xf32, #tpu.memory_space<vmem>>, %arg13: memref<16x8xf32, #tpu.memory_space<vmem>>, %arg14: memref<16x1xf32, #tpu.memory_space<vmem>>, %arg15: memref<16x12xf32, #tpu.memory_space<vmem>>, %arg16: memref<1x12xf32, #tpu.memory_space<vmem>>, %arg17: memref<1x2x12xf32, #tpu.memory_space<vmem>>, %arg18: memref<16x40xf32, #tpu.memory_space<vmem>>, %arg19: memref<16x40xf32, #tpu.memory_space<vmem>>) attributes {dimension_semantics = [#tpu.dimension_semantics<parallel>], iteration_bounds = array<i64: 1>, scalar_prefetch = 0 : i64, scratch_operands = 2 : i64, tpu.core_type = #tpu.core_type<tc>, window_params = [{transform_indices = @transform_0, window_bounds = array<i64: 1, 2, 8, 16>}, {pipeline_mode = #tpu.pipeline_mode<synchronous>, transform_indices = @transform_1, window_bounds = array<i64: 1, 36>}, {pipeline_mode = #tpu.pipeline_mode<synchronous>, transform_indices = @transform_2, window_bounds = array<i64: 3, 8, 8>}, {pipeline_mode = #tpu.pipeline_mode<synchronous>, transform_indices = @transform_3, window_bounds = array<i64: 8, 1>}, {pipeline_mode = #tpu.pipeline_mode<synchronous>, transform_indices = @transform_4, window_bounds = array<i64: 3, 8, 8>}, {pipeline_mode = #tpu.pipeline_mode<synchronous>, transform_indices = @transform_5, window_bounds = array<i64: 8, 1>}, {pipeline_mode = #tpu.pipeline_mode<synchronous>, transform_indices = @transform_6, window_bounds = array<i64: 8, 8>}, {pipeline_mode = #tpu.pipeline_mode<synchronous>, transform_indices = @transform_7, window_bounds = array<i64: 8, 1>}, {pipeline_mode = #tpu.pipeline_mode<synchronous>, transform_indices = @transform_8, window_bounds = array<i64: 3, 16, 8>}, {pipeline_mode = #tpu.pipeline_mode<synchronous>, transform_indices = @transform_9, window_bounds = array<i64: 16, 1>}, {pipeline_mode = #tpu.pipeline_mode<synchronous>, transform_indices = @transform_10, window_bounds = array<i64: 3, 16, 16>}, {pipeline_mode = #tpu.pipeline_mode<synchronous>, transform_indices = @transform_11, window_bounds = array<i64: 16, 1>}, {pipeline_mode = #tpu.pipeline_mode<synchronous>, transform_indices = @transform_12, window_bounds = array<i64: 16, 8>}, {pipeline_mode = #tpu.pipeline_mode<synchronous>, transform_indices = @transform_13, window_bounds = array<i64: 16, 1>}, {pipeline_mode = #tpu.pipeline_mode<synchronous>, transform_indices = @transform_14, window_bounds = array<i64: 16, 12>}, {pipeline_mode = #tpu.pipeline_mode<synchronous>, transform_indices = @transform_15, window_bounds = array<i64: 1, 12>}, {transform_indices = @transform_16, window_bounds = array<i64: 1, 2, 12>}]} {
    %cst = arith.constant 0.000000e+00 : f32
    %0 = vector.broadcast %cst : f32 to vector<16x4xf32>
    %c0 = arith.constant 0 : index
    %c0_0 = arith.constant 0 : index
    %1 = vector.load %arg18[%c0, %c0_0] : memref<16x40xf32, #tpu.memory_space<vmem>>, vector<16x4xf32>
    tpu.vector_store %arg18[%c0, %c0_0], %0 {strides = array<i32>} : memref<16x40xf32, #tpu.memory_space<vmem>>, vector<16x4xf32>,
    %cst_1 = arith.constant 0.000000e+00 : f32
    %2 = vector.broadcast %cst_1 : f32 to vector<16x4xf32>
    %c0_2 = arith.constant 0 : index
    %c0_3 = arith.constant 0 : index
    %3 = vector.load %arg19[%c0_2, %c0_3] : memref<16x40xf32, #tpu.memory_space<vmem>>, vector<16x4xf32>
    tpu.vector_store %arg19[%c0_2, %c0_3], %2 {strides = array<i32>} : memref<16x40xf32, #tpu.memory_space<vmem>>, vector<16x4xf32>,
    %cst_4 = arith.constant 0.000000e+00 : f32
    %4 = vector.broadcast %cst_4 : f32 to vector<8x4xf32>
    %c0_5 = arith.constant 0 : index
    %c20 = arith.constant 20 : index
    %5 = vector.load %arg18[%c0_5, %c20] : memref<16x40xf32, #tpu.memory_space<vmem>>, vector<8x4xf32>
    tpu.vector_store %arg18[%c0_5, %c20], %4 {strides = array<i32>} : memref<16x40xf32, #tpu.memory_space<vmem>>, vector<8x4xf32>,
    %c0_6 = arith.constant 0 : index
    %c0_7 = arith.constant 0 : index
    %c0_8 = arith.constant 0 : index
    %c0_9 = arith.constant 0 : index
    %6 = vector.load %arg1[%c0_6, %c0_7, %c0_8, %c0_9] : memref<1x2x8x16xf32, #tpu.memory_space<vmem>>, vector<1x1x8x16xf32>
    %7 = vector.shape_cast %6 : vector<1x1x8x16xf32> to vector<8x16xf32>
    %c0_10 = arith.constant 0 : index
    %c4 = arith.constant 4 : index
    %8 = vector.load %arg18[%c0_10, %c4] : memref<16x40xf32, #tpu.memory_space<vmem>>, vector<8x16xf32>
    tpu.vector_store %arg18[%c0_10, %c4], %7 {strides = array<i32>} : memref<16x40xf32, #tpu.memory_space<vmem>>, vector<8x16xf32>,
    %c0_11 = arith.constant 0 : index
    %c1 = arith.constant 1 : index
    %c0_12 = arith.constant 0 : index
    %c0_13 = arith.constant 0 : index
    %9 = vector.load %arg1[%c0_11, %c1, %c0_12, %c0_13] : memref<1x2x8x16xf32, #tpu.memory_space<vmem>>, vector<1x1x8x16xf32>
    %10 = vector.shape_cast %9 : vector<1x1x8x16xf32> to vector<8x16xf32>
    %c0_14 = arith.constant 0 : index
    %c24 = arith.constant 24 : index
    %11 = vector.load %arg18[%c0_14, %c24] : memref<16x40xf32, #tpu.memory_space<vmem>>, vector<8x16xf32>
    tpu.vector_store %arg18[%c0_14, %c24], %10 {strides = array<i32>} : memref<16x40xf32, #tpu.memory_space<vmem>>, vector<8x16xf32>,
    %c0_15 = arith.constant 0 : index
    %c0_16 = arith.constant 0 : index
    %12 = vector.load %arg2[%c0_15, %c0_16] : memref<1x36xf32, #tpu.memory_space<vmem>>, vector<1x36xf32>
    %cst_17 = arith.constant 0.000000e+00 : f32
    %13 = vector.broadcast %cst_17 : f32 to vector<8x36xf32>
    %c0_18 = arith.constant 0 : index
    %c0_19 = arith.constant 0 : index
    %c0_20 = arith.constant 0 : index
    %14 = vector.load %arg3[%c0_18, %c0_19, %c0_20] : memref<3x8x8xf32, #tpu.memory_space<vmem>>, vector<1x8x8xf32>
    %15 = vector.shape_cast %14 : vector<1x8x8xf32> to vector<8x8xf32>
    %c0_21 = arith.constant 0 : index
    %c2 = arith.constant 2 : index
    %16 = vector.load %arg18[%c0_21, %c2] : memref<16x40xf32, #tpu.memory_space<vmem>>, vector<8x36xf32>
    %cst_22 = arith.constant dense<0.000000e+00> : vector<8x36xf32>
    %17 = tpu.matmul %15, %16, %cst_22 {dimension_numbers = #tpu.dot_dimension_numbers<[1], [0], [0], [1], [0, 0, 1, 1], [], []>} : vector<8x8xf32>, vector<8x36xf32>, vector<8x36xf32> -> vector<8x36xf32>
    %18 = arith.addf %13, %17 : vector<8x36xf32>
    %c1_23 = arith.constant 1 : index
    %c0_24 = arith.constant 0 : index
    %c0_25 = arith.constant 0 : index
    %19 = vector.load %arg3[%c1_23, %c0_24, %c0_25] : memref<3x8x8xf32, #tpu.memory_space<vmem>>, vector<1x8x8xf32>
    %20 = vector.shape_cast %19 : vector<1x8x8xf32> to vector<8x8xf32>
    %c0_26 = arith.constant 0 : index
    %c3 = arith.constant 3 : index
    %21 = vector.load %arg18[%c0_26, %c3] : memref<16x40xf32, #tpu.memory_space<vmem>>, vector<8x36xf32>
    %cst_27 = arith.constant dense<0.000000e+00> : vector<8x36xf32>
    %22 = tpu.matmul %20, %21, %cst_27 {dimension_numbers = #tpu.dot_dimension_numbers<[1], [0], [0], [1], [0, 0, 1, 1], [], []>} : vector<8x8xf32>, vector<8x36xf32>, vector<8x36xf32> -> vector<8x36xf32>
    %23 = arith.addf %18, %22 : vector<8x36xf32>
    %c2_28 = arith.constant 2 : index
    %c0_29 = arith.constant 0 : index
    %c0_30 = arith.constant 0 : index
    %24 = vector.load %arg3[%c2_28, %c0_29, %c0_30] : memref<3x8x8xf32, #tpu.memory_space<vmem>>, vector<1x8x8xf32>
    %25 = vector.shape_cast %24 : vector<1x8x8xf32> to vector<8x8xf32>
    %c0_31 = arith.constant 0 : index
    %c4_32 = arith.constant 4 : index
    %26 = vector.load %arg18[%c0_31, %c4_32] : memref<16x40xf32, #tpu.memory_space<vmem>>, vector<8x36xf32>
    %cst_33 = arith.constant dense<0.000000e+00> : vector<8x36xf32>
    %27 = tpu.matmul %25, %26, %cst_33 {dimension_numbers = #tpu.dot_dimension_numbers<[1], [0], [0], [1], [0, 0, 1, 1], [], []>} : vector<8x8xf32>, vector<8x36xf32>, vector<8x36xf32> -> vector<8x36xf32>
    %28 = arith.addf %23, %27 : vector<8x36xf32>
    %c0_34 = arith.constant 0 : index
    %c0_35 = arith.constant 0 : index
    %29 = vector.load %arg4[%c0_34, %c0_35] : memref<8x1xf32, #tpu.memory_space<vmem>>, vector<8x1xf32>
    %30 = vector.broadcast %29 : vector<8x1xf32> to vector<8x36xf32>
    %31 = arith.addf %28, %30 : vector<8x36xf32>
    %cst_36 = arith.constant 0.000000e+00 : f32
    %32 = vector.broadcast %cst_36 : f32 to vector<8x36xf32>
    %33 = arith.maximumf %31, %32 : vector<8x36xf32>
    %34 = vector.broadcast %12 : vector<1x36xf32> to vector<8x36xf32>
    %35 = arith.mulf %33, %34 : vector<8x36xf32>
    %c0_37 = arith.constant 0 : index
    %c4_38 = arith.constant 4 : index
    %36 = vector.load %arg19[%c0_37, %c4_38] : memref<16x40xf32, #tpu.memory_space<vmem>>, vector<8x36xf32>
    tpu.vector_store %arg19[%c0_37, %c4_38], %35 {strides = array<i32>} : memref<16x40xf32, #tpu.memory_space<vmem>>, vector<8x36xf32>,
    %cst_39 = arith.constant 0.000000e+00 : f32
    %37 = vector.broadcast %cst_39 : f32 to vector<8x36xf32>
    %c0_40 = arith.constant 0 : index
    %c0_41 = arith.constant 0 : index
    %c0_42 = arith.constant 0 : index
    %38 = vector.load %arg5[%c0_40, %c0_41, %c0_42] : memref<3x8x8xf32, #tpu.memory_space<vmem>>, vector<1x8x8xf32>
    %39 = vector.shape_cast %38 : vector<1x8x8xf32> to vector<8x8xf32>
    %c0_43 = arith.constant 0 : index
    %c2_44 = arith.constant 2 : index
    %40 = vector.load %arg19[%c0_43, %c2_44] : memref<16x40xf32, #tpu.memory_space<vmem>>, vector<8x36xf32>
    %cst_45 = arith.constant dense<0.000000e+00> : vector<8x36xf32>
    %41 = tpu.matmul %39, %40, %cst_45 {dimension_numbers = #tpu.dot_dimension_numbers<[1], [0], [0], [1], [0, 0, 1, 1], [], []>} : vector<8x8xf32>, vector<8x36xf32>, vector<8x36xf32> -> vector<8x36xf32>
    %42 = arith.addf %37, %41 : vector<8x36xf32>
    %c1_46 = arith.constant 1 : index
    %c0_47 = arith.constant 0 : index
    %c0_48 = arith.constant 0 : index
    %43 = vector.load %arg5[%c1_46, %c0_47, %c0_48] : memref<3x8x8xf32, #tpu.memory_space<vmem>>, vector<1x8x8xf32>
    %44 = vector.shape_cast %43 : vector<1x8x8xf32> to vector<8x8xf32>
    %c0_49 = arith.constant 0 : index
    %c3_50 = arith.constant 3 : index
    %45 = vector.load %arg19[%c0_49, %c3_50] : memref<16x40xf32, #tpu.memory_space<vmem>>, vector<8x36xf32>
    %cst_51 = arith.constant dense<0.000000e+00> : vector<8x36xf32>
    %46 = tpu.matmul %44, %45, %cst_51 {dimension_numbers = #tpu.dot_dimension_numbers<[1], [0], [0], [1], [0, 0, 1, 1], [], []>} : vector<8x8xf32>, vector<8x36xf32>, vector<8x36xf32> -> vector<8x36xf32>
    %47 = arith.addf %42, %46 : vector<8x36xf32>
    %c2_52 = arith.constant 2 : index
    %c0_53 = arith.constant 0 : index
    %c0_54 = arith.constant 0 : index
    %48 = vector.load %arg5[%c2_52, %c0_53, %c0_54] : memref<3x8x8xf32, #tpu.memory_space<vmem>>, vector<1x8x8xf32>
    %49 = vector.shape_cast %48 : vector<1x8x8xf32> to vector<8x8xf32>
    %c0_55 = arith.constant 0 : index
    %c4_56 = arith.constant 4 : index
    %50 = vector.load %arg19[%c0_55, %c4_56] : memref<16x40xf32, #tpu.memory_space<vmem>>, vector<8x36xf32>
    %cst_57 = arith.constant dense<0.000000e+00> : vector<8x36xf32>
    %51 = tpu.matmul %49, %50, %cst_57 {dimension_numbers = #tpu.dot_dimension_numbers<[1], [0], [0], [1], [0, 0, 1, 1], [], []>} : vector<8x8xf32>, vector<8x36xf32>, vector<8x36xf32> -> vector<8x36xf32>
    %52 = arith.addf %47, %51 : vector<8x36xf32>
    %c0_58 = arith.constant 0 : index
    %c0_59 = arith.constant 0 : index
    %53 = vector.load %arg6[%c0_58, %c0_59] : memref<8x1xf32, #tpu.memory_space<vmem>>, vector<8x1xf32>
    %54 = vector.broadcast %53 : vector<8x1xf32> to vector<8x36xf32>
    %55 = arith.addf %52, %54 : vector<8x36xf32>
    %cst_60 = arith.constant 0.000000e+00 : f32
    %56 = vector.broadcast %cst_60 : f32 to vector<8x36xf32>
    %57 = arith.maximumf %55, %56 : vector<8x36xf32>
    %c0_61 = arith.constant 0 : index
    %c4_62 = arith.constant 4 : index
    %58 = vector.load %arg18[%c0_61, %c4_62] : memref<16x40xf32, #tpu.memory_space<vmem>>, vector<8x36xf32>
    %c0_63 = arith.constant 0 : index
    %c0_64 = arith.constant 0 : index
    %59 = vector.load %arg7[%c0_63, %c0_64] : memref<8x8xf32, #tpu.memory_space<vmem>>, vector<8x8xf32>
    %cst_65 = arith.constant dense<0.000000e+00> : vector<8x36xf32>
    %60 = tpu.matmul %59, %58, %cst_65 {dimension_numbers = #tpu.dot_dimension_numbers<[1], [0], [0], [1], [0, 0, 1, 1], [], []>} : vector<8x8xf32>, vector<8x36xf32>, vector<8x36xf32> -> vector<8x36xf32>
    %c0_66 = arith.constant 0 : index
    %c0_67 = arith.constant 0 : index
    %61 = vector.load %arg8[%c0_66, %c0_67] : memref<8x1xf32, #tpu.memory_space<vmem>>, vector<8x1xf32>
    %62 = vector.broadcast %61 : vector<8x1xf32> to vector<8x36xf32>
    %63 = arith.addf %60, %62 : vector<8x36xf32>
    %64 = arith.addf %57, %63 : vector<8x36xf32>
    %cst_68 = arith.constant 0.000000e+00 : f32
    %65 = vector.broadcast %cst_68 : f32 to vector<8x36xf32>
    %66 = arith.maximumf %64, %65 : vector<8x36xf32>
    %67 = vector.broadcast %12 : vector<1x36xf32> to vector<8x36xf32>
    %68 = arith.mulf %66, %67 : vector<8x36xf32>
    %c0_69 = arith.constant 0 : index
    %c4_70 = arith.constant 4 : index
    %69 = vector.load %arg18[%c0_69, %c4_70] : memref<16x40xf32, #tpu.memory_space<vmem>>, vector<8x36xf32>
    tpu.vector_store %arg18[%c0_69, %c4_70], %68 {strides = array<i32>} : memref<16x40xf32, #tpu.memory_space<vmem>>, vector<8x36xf32>,
    %cst_71 = arith.constant 0.000000e+00 : f32
    %70 = vector.broadcast %cst_71 : f32 to vector<16x36xf32>
    %c0_72 = arith.constant 0 : index
    %c0_73 = arith.constant 0 : index
    %c0_74 = arith.constant 0 : index
    %71 = vector.load %arg9[%c0_72, %c0_73, %c0_74] : memref<3x16x8xf32, #tpu.memory_space<vmem>>, vector<1x16x8xf32>
    %72 = vector.shape_cast %71 : vector<1x16x8xf32> to vector<16x8xf32>
    %c0_75 = arith.constant 0 : index
    %c0_76 = arith.constant 0 : index
    %73 = vector.load %arg18[%c0_75, %c0_76] : memref<16x40xf32, #tpu.memory_space<vmem>>, vector<8x36xf32>
    %cst_77 = arith.constant dense<0.000000e+00> : vector<16x36xf32>
    %74 = tpu.matmul %72, %73, %cst_77 {dimension_numbers = #tpu.dot_dimension_numbers<[1], [0], [0], [1], [0, 0, 1, 1], [], []>} : vector<16x8xf32>, vector<8x36xf32>, vector<16x36xf32> -> vector<16x36xf32>
    %75 = arith.addf %70, %74 : vector<16x36xf32>
    %c1_78 = arith.constant 1 : index
    %c0_79 = arith.constant 0 : index
    %c0_80 = arith.constant 0 : index
    %76 = vector.load %arg9[%c1_78, %c0_79, %c0_80] : memref<3x16x8xf32, #tpu.memory_space<vmem>>, vector<1x16x8xf32>
    %77 = vector.shape_cast %76 : vector<1x16x8xf32> to vector<16x8xf32>
    %c0_81 = arith.constant 0 : index
    %c2_82 = arith.constant 2 : index
    %78 = vector.load %arg18[%c0_81, %c2_82] : memref<16x40xf32, #tpu.memory_space<vmem>>, vector<8x36xf32>
    %cst_83 = arith.constant dense<0.000000e+00> : vector<16x36xf32>
    %79 = tpu.matmul %77, %78, %cst_83 {dimension_numbers = #tpu.dot_dimension_numbers<[1], [0], [0], [1], [0, 0, 1, 1], [], []>} : vector<16x8xf32>, vector<8x36xf32>, vector<16x36xf32> -> vector<16x36xf32>
    %80 = arith.addf %75, %79 : vector<16x36xf32>
    %c2_84 = arith.constant 2 : index
    %c0_85 = arith.constant 0 : index
    %c0_86 = arith.constant 0 : index
    %81 = vector.load %arg9[%c2_84, %c0_85, %c0_86] : memref<3x16x8xf32, #tpu.memory_space<vmem>>, vector<1x16x8xf32>
    %82 = vector.shape_cast %81 : vector<1x16x8xf32> to vector<16x8xf32>
    %c0_87 = arith.constant 0 : index
    %c4_88 = arith.constant 4 : index
    %83 = vector.load %arg18[%c0_87, %c4_88] : memref<16x40xf32, #tpu.memory_space<vmem>>, vector<8x36xf32>
    %cst_89 = arith.constant dense<0.000000e+00> : vector<16x36xf32>
    %84 = tpu.matmul %82, %83, %cst_89 {dimension_numbers = #tpu.dot_dimension_numbers<[1], [0], [0], [1], [0, 0, 1, 1], [], []>} : vector<16x8xf32>, vector<8x36xf32>, vector<16x36xf32> -> vector<16x36xf32>
    %85 = arith.addf %80, %84 : vector<16x36xf32>
    %c0_90 = arith.constant 0 : index
    %c0_91 = arith.constant 0 : index
    %86 = vector.load %arg10[%c0_90, %c0_91] : memref<16x1xf32, #tpu.memory_space<vmem>>, vector<16x1xf32>
    %87 = vector.broadcast %86 : vector<16x1xf32> to vector<16x36xf32>
    %88 = arith.addf %85, %87 : vector<16x36xf32>
    %cst_92 = arith.constant 0.000000e+00 : f32
    %89 = vector.broadcast %cst_92 : f32 to vector<16x36xf32>
    %90 = arith.maximumf %88, %89 : vector<16x36xf32>
    %91 = vector.broadcast %12 : vector<1x36xf32> to vector<16x36xf32>
    %92 = arith.mulf %90, %91 : vector<16x36xf32>
    %c0_93 = arith.constant 0 : index
    %c4_94 = arith.constant 4 : index
    %93 = vector.load %arg19[%c0_93, %c4_94] : memref<16x40xf32, #tpu.memory_space<vmem>>, vector<16x36xf32>
    tpu.vector_store %arg19[%c0_93, %c4_94], %92 {strides = array<i32>} : memref<16x40xf32, #tpu.memory_space<vmem>>, vector<16x36xf32>,
    %cst_95 = arith.constant 0.000000e+00 : f32
    %94 = vector.broadcast %cst_95 : f32 to vector<16x36xf32>
    %c0_96 = arith.constant 0 : index
    %c0_97 = arith.constant 0 : index
    %c0_98 = arith.constant 0 : index
    %95 = vector.load %arg11[%c0_96, %c0_97, %c0_98] : memref<3x16x16xf32, #tpu.memory_space<vmem>>, vector<1x16x16xf32>
    %96 = vector.shape_cast %95 : vector<1x16x16xf32> to vector<16x16xf32>
    %c0_99 = arith.constant 0 : index
    %c0_100 = arith.constant 0 : index
    %97 = vector.load %arg19[%c0_99, %c0_100] : memref<16x40xf32, #tpu.memory_space<vmem>>, vector<16x36xf32>
    %cst_101 = arith.constant dense<0.000000e+00> : vector<16x36xf32>
    %98 = tpu.matmul %96, %97, %cst_101 {dimension_numbers = #tpu.dot_dimension_numbers<[1], [0], [0], [1], [0, 0, 1, 1], [], []>} : vector<16x16xf32>, vector<16x36xf32>, vector<16x36xf32> -> vector<16x36xf32>
    %99 = arith.addf %94, %98 : vector<16x36xf32>
    %c1_102 = arith.constant 1 : index
    %c0_103 = arith.constant 0 : index
    %c0_104 = arith.constant 0 : index
    %100 = vector.load %arg11[%c1_102, %c0_103, %c0_104] : memref<3x16x16xf32, #tpu.memory_space<vmem>>, vector<1x16x16xf32>
    %101 = vector.shape_cast %100 : vector<1x16x16xf32> to vector<16x16xf32>
    %c0_105 = arith.constant 0 : index
    %c2_106 = arith.constant 2 : index
    %102 = vector.load %arg19[%c0_105, %c2_106] : memref<16x40xf32, #tpu.memory_space<vmem>>, vector<16x36xf32>
    %cst_107 = arith.constant dense<0.000000e+00> : vector<16x36xf32>
    %103 = tpu.matmul %101, %102, %cst_107 {dimension_numbers = #tpu.dot_dimension_numbers<[1], [0], [0], [1], [0, 0, 1, 1], [], []>} : vector<16x16xf32>, vector<16x36xf32>, vector<16x36xf32> -> vector<16x36xf32>
    %104 = arith.addf %99, %103 : vector<16x36xf32>
    %c2_108 = arith.constant 2 : index
    %c0_109 = arith.constant 0 : index
    %c0_110 = arith.constant 0 : index
    %105 = vector.load %arg11[%c2_108, %c0_109, %c0_110] : memref<3x16x16xf32, #tpu.memory_space<vmem>>, vector<1x16x16xf32>
    %106 = vector.shape_cast %105 : vector<1x16x16xf32> to vector<16x16xf32>
    %c0_111 = arith.constant 0 : index
    %c4_112 = arith.constant 4 : index
    %107 = vector.load %arg19[%c0_111, %c4_112] : memref<16x40xf32, #tpu.memory_space<vmem>>, vector<16x36xf32>
    %cst_113 = arith.constant dense<0.000000e+00> : vector<16x36xf32>
    %108 = tpu.matmul %106, %107, %cst_113 {dimension_numbers = #tpu.dot_dimension_numbers<[1], [0], [0], [1], [0, 0, 1, 1], [], []>} : vector<16x16xf32>, vector<16x36xf32>, vector<16x36xf32> -> vector<16x36xf32>
    %109 = arith.addf %104, %108 : vector<16x36xf32>
    %c0_114 = arith.constant 0 : index
    %c0_115 = arith.constant 0 : index
    %110 = vector.load %arg12[%c0_114, %c0_115] : memref<16x1xf32, #tpu.memory_space<vmem>>, vector<16x1xf32>
    %111 = vector.broadcast %110 : vector<16x1xf32> to vector<16x36xf32>
    %112 = arith.addf %109, %111 : vector<16x36xf32>
    %cst_116 = arith.constant 0.000000e+00 : f32
    %113 = vector.broadcast %cst_116 : f32 to vector<16x36xf32>
    %114 = arith.maximumf %112, %113 : vector<16x36xf32>
    %c0_117 = arith.constant 0 : index
    %c4_118 = arith.constant 4 : index
    %115 = vector.load %arg18[%c0_117, %c4_118] : memref<16x40xf32, #tpu.memory_space<vmem>>, vector<8x36xf32>
    %c0_119 = arith.constant 0 : index
    %c0_120 = arith.constant 0 : index
    %116 = vector.load %arg13[%c0_119, %c0_120] : memref<16x8xf32, #tpu.memory_space<vmem>>, vector<16x8xf32>
    %cst_121 = arith.constant dense<0.000000e+00> : vector<16x36xf32>
    %117 = tpu.matmul %116, %115, %cst_121 {dimension_numbers = #tpu.dot_dimension_numbers<[1], [0], [0], [1], [0, 0, 1, 1], [], []>} : vector<16x8xf32>, vector<8x36xf32>, vector<16x36xf32> -> vector<16x36xf32>
    %c0_122 = arith.constant 0 : index
    %c0_123 = arith.constant 0 : index
    %118 = vector.load %arg14[%c0_122, %c0_123] : memref<16x1xf32, #tpu.memory_space<vmem>>, vector<16x1xf32>
    %119 = vector.broadcast %118 : vector<16x1xf32> to vector<16x36xf32>
    %120 = arith.addf %117, %119 : vector<16x36xf32>
    %121 = arith.addf %114, %120 : vector<16x36xf32>
    %cst_124 = arith.constant 0.000000e+00 : f32
    %122 = vector.broadcast %cst_124 : f32 to vector<16x36xf32>
    %123 = arith.maximumf %121, %122 : vector<16x36xf32>
    %c0_125 = arith.constant 0 : index
    %c0_126 = arith.constant 0 : index
    %124 = vector.load %arg15[%c0_125, %c0_126] : memref<16x12xf32, #tpu.memory_space<vmem>>, vector<16x12xf32>
    %c0_127 = arith.constant 0 : index
    %c0_128 = arith.constant 0 : index
    %125 = vector.load %arg16[%c0_127, %c0_128] : memref<1x12xf32, #tpu.memory_space<vmem>>, vector<1x12xf32>
    %126 = vector.extract_strided_slice %123 {offsets = [0, 15], sizes = [16, 1], strides = [1, 1]} : vector<16x36xf32> to vector<16x1xf32>
    %127 = vector.extract_strided_slice %123 {offsets = [0, 35], sizes = [16, 1], strides = [1, 1]} : vector<16x36xf32> to vector<16x1xf32>
    %128 = tpu.concatenate %126, %127 in 1 : vector<16x1xf32>, vector<16x1xf32> -> vector<16x2xf32>
    %cst_129 = arith.constant dense<0.000000e+00> : vector<2x12xf32>
    %129 = tpu.matmul %128, %124, %cst_129 {dimension_numbers = #tpu.dot_dimension_numbers<[0], [0], [1], [1], [0, 1, 1, 1], [], []>} : vector<16x2xf32>, vector<16x12xf32>, vector<2x12xf32> -> vector<2x12xf32>
    %130 = vector.broadcast %125 : vector<1x12xf32> to vector<2x12xf32>
    %131 = arith.addf %129, %130 : vector<2x12xf32>
    %c0_130 = arith.constant 0 : index
    %c0_131 = arith.constant 0 : index
    %c0_132 = arith.constant 0 : index
    %132 = vector.load %arg17[%c0_130, %c0_131, %c0_132] : memref<1x2x12xf32, #tpu.memory_space<vmem>>, vector<1x2x12xf32>
    %133 = vector.shape_cast %132 : vector<1x2x12xf32> to vector<2x12xf32>
    %134 = vector.shape_cast %131 : vector<2x12xf32> to vector<1x2x12xf32>
    tpu.vector_store %arg17[%c0_130, %c0_131, %c0_132], %134 {strides = array<i32>} : memref<1x2x12xf32, #tpu.memory_space<vmem>>, vector<1x2x12xf32>,
    return
  }
  func.func @transform_0(%arg0: i32) -> (i32, i32, i32, i32) {
    %c0_i32 = arith.constant 0 : i32
    %c0_i32_0 = arith.constant 0 : i32
    %c0_i32_1 = arith.constant 0 : i32
    %c0_i32_2 = arith.constant 0 : i32
    return %arg0, %c0_i32, %c0_i32_0, %c0_i32_1 : i32, i32, i32, i32
  }
  func.func @transform_1(%arg0: i32) -> (i32, i32) {
    %c0_i32 = arith.constant 0 : i32
    %c0_i32_0 = arith.constant 0 : i32
    %c0_i32_1 = arith.constant 0 : i32
    return %c0_i32, %c0_i32_0 : i32, i32
  }
  func.func @transform_2(%arg0: i32) -> (i32, i32, i32) {
    %c0_i32 = arith.constant 0 : i32
    %c0_i32_0 = arith.constant 0 : i32
    %c0_i32_1 = arith.constant 0 : i32
    %c0_i32_2 = arith.constant 0 : i32
    return %c0_i32, %c0_i32_0, %c0_i32_1 : i32, i32, i32
  }
  func.func @transform_3(%arg0: i32) -> (i32, i32) {
    %c0_i32 = arith.constant 0 : i32
    %c0_i32_0 = arith.constant 0 : i32
    %c0_i32_1 = arith.constant 0 : i32
    return %c0_i32, %c0_i32_0 : i32, i32
  }
  func.func @transform_4(%arg0: i32) -> (i32, i32, i32) {
    %c0_i32 = arith.constant 0 : i32
    %c0_i32_0 = arith.constant 0 : i32
    %c0_i32_1 = arith.constant 0 : i32
    %c0_i32_2 = arith.constant 0 : i32
    return %c0_i32, %c0_i32_0, %c0_i32_1 : i32, i32, i32
  }
  func.func @transform_5(%arg0: i32) -> (i32, i32) {
    %c0_i32 = arith.constant 0 : i32
    %c0_i32_0 = arith.constant 0 : i32
    %c0_i32_1 = arith.constant 0 : i32
    return %c0_i32, %c0_i32_0 : i32, i32
  }
  func.func @transform_6(%arg0: i32) -> (i32, i32) {
    %c0_i32 = arith.constant 0 : i32
    %c0_i32_0 = arith.constant 0 : i32
    %c0_i32_1 = arith.constant 0 : i32
    return %c0_i32, %c0_i32_0 : i32, i32
  }
  func.func @transform_7(%arg0: i32) -> (i32, i32) {
    %c0_i32 = arith.constant 0 : i32
    %c0_i32_0 = arith.constant 0 : i32
    %c0_i32_1 = arith.constant 0 : i32
    return %c0_i32, %c0_i32_0 : i32, i32
  }
  func.func @transform_8(%arg0: i32) -> (i32, i32, i32) {
    %c0_i32 = arith.constant 0 : i32
    %c0_i32_0 = arith.constant 0 : i32
    %c0_i32_1 = arith.constant 0 : i32
    %c0_i32_2 = arith.constant 0 : i32
    return %c0_i32, %c0_i32_0, %c0_i32_1 : i32, i32, i32
  }
  func.func @transform_9(%arg0: i32) -> (i32, i32) {
    %c0_i32 = arith.constant 0 : i32
    %c0_i32_0 = arith.constant 0 : i32
    %c0_i32_1 = arith.constant 0 : i32
    return %c0_i32, %c0_i32_0 : i32, i32
  }
  func.func @transform_10(%arg0: i32) -> (i32, i32, i32) {
    %c0_i32 = arith.constant 0 : i32
    %c0_i32_0 = arith.constant 0 : i32
    %c0_i32_1 = arith.constant 0 : i32
    %c0_i32_2 = arith.constant 0 : i32
    return %c0_i32, %c0_i32_0, %c0_i32_1 : i32, i32, i32
  }
  func.func @transform_11(%arg0: i32) -> (i32, i32) {
    %c0_i32 = arith.constant 0 : i32
    %c0_i32_0 = arith.constant 0 : i32
    %c0_i32_1 = arith.constant 0 : i32
    return %c0_i32, %c0_i32_0 : i32, i32
  }
  func.func @transform_12(%arg0: i32) -> (i32, i32) {
    %c0_i32 = arith.constant 0 : i32
    %c0_i32_0 = arith.constant 0 : i32
    %c0_i32_1 = arith.constant 0 : i32
    return %c0_i32, %c0_i32_0 : i32, i32
  }
  func.func @transform_13(%arg0: i32) -> (i32, i32) {
    %c0_i32 = arith.constant 0 : i32
    %c0_i32_0 = arith.constant 0 : i32
    %c0_i32_1 = arith.constant 0 : i32
    return %c0_i32, %c0_i32_0 : i32, i32
  }
  func.func @transform_14(%arg0: i32) -> (i32, i32) {
    %c0_i32 = arith.constant 0 : i32
    %c0_i32_0 = arith.constant 0 : i32
    %c0_i32_1 = arith.constant 0 : i32
    return %c0_i32, %c0_i32_0 : i32, i32
  }
  func.func @transform_15(%arg0: i32) -> (i32, i32) {
    %c0_i32 = arith.constant 0 : i32
    %c0_i32_0 = arith.constant 0 : i32
    %c0_i32_1 = arith.constant 0 : i32
    return %c0_i32, %c0_i32_0 : i32, i32
  }
  func.func @transform_16(%arg0: i32) -> (i32, i32, i32) {
    %c0_i32 = arith.constant 0 : i32
    %c0_i32_0 = arith.constant 0 : i32
    %c0_i32_1 = arith.constant 0 : i32
    return %arg0, %c0_i32, %c0_i32_0 : i32, i32, i32
  }
}

</mosaic_0001>

<bundles_post_ra>
// kernel: tcn_forecast.1
= control target key start
LH: loop header
LB: loop body
LE: loop exit
PB: predicated region body
PF: predicated region fallthrough
CT: control target
= control target key end

     0   :  { %vm53_vm0 = vcmask 31744   ;;  %vm58_vm1 = vcmask 195744   ;;  %v1694_v1 = vmov 0.0   ;;  %s1695_s24 = smov 4   ;;  %s1696_s27 = smov 24   ;;  %vm65_vm2 = vcmask 162848   ;;  %s1977_s0 = inlined_call_operand.vmem [shape: f32[1,2,8,16], index: 0, kind: input, shape index: {}]   ;;  %s1978_s3 = inlined_call_operand.vmem [shape: f32[8,1], index: 3, kind: input, shape index: {}]   ;;  %s1979_s2 = inlined_call_operand.vmem [shape: f32[3,8,8], index: 2, kind: input, shape index: {}]   ;;  %s1980_s1 = inlined_call_operand.vmem [shape: f32[1,36], index: 1, kind: input, shape index: {}]   ;;  %s1981_s5 = inlined_call_operand.vmem [shape: f32[8,1], index: 5, kind: input, shape index: {}]   ;;  %s1982_s7 = inlined_call_operand.vmem [shape: f32[8,1], index: 7, kind: input, shape index: {}]   ;;  %s1983_s4 = inlined_call_operand.vmem [shape: f32[3,8,8], index: 4, kind: input, shape index: {}]   ;;  %s1984_s6 = inlined_call_operand.vmem [shape: f32[8,8], index: 6, kind: input, shape index: {}]   ;;  %s1985_s8 = inlined_call_operand.vmem [shape: f32[3,16,8], index: 8, kind: input, shape index: {}]   ;;  %s1986_s9 = inlined_call_operand.vmem [shape: f32[16,1], index: 9, kind: input, shape index: {}]   ;;  %s1987_s12 = inlined_call_operand.vmem [shape: f32[16,8], index: 12, kind: input, shape index: {}]   ;;  %s1988_s10 = inlined_call_operand.vmem [shape: f32[3,16,16], index: 10, kind: input, shape index: {}]   ;;  %s1989_s11 = inlined_call_operand.vmem [shape: f32[16,1], index: 11, kind: input, shape index: {}]   ;;  %s1990_s13 = inlined_call_operand.vmem [shape: f32[16,1], index: 13, kind: input, shape index: {}]   ;;  %s1991_s14 = inlined_call_operand.vmem [shape: f32[16,12], index: 14, kind: input, shape index: {}]   ;;  %s1992_s15 = inlined_call_operand.vmem [shape: f32[1,12], index: 15, kind: input, shape index: {}]   ;;  %s1993_s16 = inlined_call_operand.vmem [shape: f32[1,2,12], index: 16, kind: output, shape index: {}]  }
   0x1   :  { %1995 = sst [smem:[#allocation4_spill]] %s1977_s0  ;;  %54 = vst.msk [vmem:[#allocation2] sm:$0xff] %vm53_vm0, %v1694_v1  ;;  %56 = vst.msk [vmem:[#allocation3] sm:$0xff] %vm53_vm0, %v1694_v1  ;;  %1565 = vmatprep.subr.mxu0 %v1694_v1  ;;  %1570 = vmatprep.subr.mxu1 %v1694_v1  ;;  %vm1697_vm3 = vmmov 0   ;;  %vm73_vm4 = vcmask 326848   ;;  %v1698_v5 = vmov 0  }
   0x2   :  { %s1996_s23 = sld [smem:[#allocation4_spill]]  ;;  %57 = vst.msk [vmem:[#allocation3 + $0x8] sm:$0xff] %vm53_vm0, %v1694_v1  ;;  %1567 = vmatprep.mubr.msk.f32.mxu0 %vm1697_vm3, %v1694_v1  ;;  %1572 = vmatprep.mubr.msk.f32.mxu1 %vm1697_vm3, %v1694_v1  ;;  %s1699_s28 = smov 124   ;;  %v313_v7 = vld [vmem:[%s1978_s3] sm:$0xff]  ;;  %v1488_v8 = vld [vmem:[%s1979_s2 + $0x8] sm:$0xff]  ;;  %vm84_vm5 = vcmask 64512  }
   0x3   :  { %59 = vst.msk [vmem:[#allocation2] sm:$0xff] %vm58_vm1, %v1694_v1  ;;  %1682 = vset.pattern.permute.xlu1 %v1698_v5  ;;  %1683 = vset.pattern.permute.xlu0 %v1698_v5  ;;  %s1700_s29 = smov 125   ;;  %s1701_s30 = smov 126   ;;  %v76_v11 = vld [vmem:[%s1979_s2] sm:$0xff]  ;;  %v1491_v12 = vld [vmem:[%s1979_s2 + $0x10] sm:$0xff]  ;;  %vm332_vm6 = vcmask 326688  }
   0x4   :  { %v1837_v24 = vld [vmem:[%s1980_s1] ss:$0 sm:$0xff]  ;;  %v1494_v31 = vld [vmem:[%s1983_s4 + $0x8] sm:$0xff]  ;;  %v1497_v35 = vld [vmem:[%s1983_s4 + $0x10] sm:$0xff]  ;;  %vm975_vm7 = vcmask 130048   ;;  %vm1367_vm8 = vcmask 7168  }
   0x5   :  { %v570_v29 = vld [vmem:[%s1981_s5] sm:$0xff]  ;;  %v1500_v57 = vld [vmem:[%s1985_s8 + $0x10] sm:$0xff]  ;;  %v933_v60 = vld [vmem:[%s1986_s9 + $0x8] sm:$0xff]  ;;  %s1704_s5 = smov 113   ;;  %vm1481_vm9 = vcmask 91136  }
   0x6   :  { %v580_v30 = vld [vmem:[%s1982_s7] sm:$0xff]  ;;  %v1501_v63 = vld [vmem:[%s1985_s8 + $0x18] sm:$0xff]  ;;  %v1507_v5 = vld [vmem:[%s1985_s8 + $0x28] sm:$0xff] }
   0x7   :  { %v334_v32 = vld [vmem:[%s1983_s4] sm:$0xff] }
   0x8   :  { %v60_v0 = vld [vmem:[%s1996_s23] sm:$0xff]  ;;  %v1487_v2 = vld [vmem:[%s1996_s23 + $0x8] sm:$0xff] }
   0x9   :  { %62 = vrot.lane.b32.xlu0 %v60_v0, %s1695_s24  ;;  %v579_v36 = vld [vmem:[%s1984_s6] sm:$0xff] }
   0xa   :  { %v932_v61 = vld [vmem:[%s1986_s9] sm:$0xff] }
   0xb   :  { %v671_v0 = vld [vmem:[%s1985_s8] sm:$0xff] }
   0xd   :  { %70 = vrot.lane.b32.xlu0 %v1487_v2, %s1696_s27 }
  0x7b   :  { %v63_v3 = vpop.permute.xlu0 %62 }
  0x7c   :  { %66 = vst.msk [vmem:[#allocation2] sm:$0xff] %vm65_vm2, %v63_v3  ;;  %v672_v3 = vld [vmem:[%s1985_s8 + $0x8] sm:$0xff] }
  0x7f   :  { %v71_v4 = vpop.permute.xlu0 %70 }
  0x80   :  { %74 = vst.msk [vmem:[#allocation2] sm:$0xff] %vm73_vm4, %v71_v4  ;;  %v1506_v4 = vld [vmem:[%s1985_s8 + $0x20] sm:$0xff]  ;;  %s1703_s8 = smov 94  }
  0x87   :  { %v77_v6 = vld [vmem:[#allocation2] sm:$0xff] }
  0x88   :  { %236 = vrot.lane.b32.xlu0 %v77_v6, %s1699_s28  ;;  %81 = vrot.lane.b32.xlu1 %v77_v6, %s1700_s29 }
  0x8c   :  { %158 = vrot.lane.b32.xlu1 %v77_v6, %s1701_s30 }
  0x90   :  { %316 = vperm.xlu1 %1682, %v313_v7  }
  0xfa   :  { %v82_v9 = vpop.permute.xlu1 %81  ;;  %v237_v10 = vpop.permute.xlu0 %236 }
  0xfb   :  { %1566 = vmatpush3.msra.mxu0 %v82_v9 }
  0xfc   :  { %1575 = vmatprep.subr.mxu0 %v1694_v1  ;;  %1568 = vmatmul.mubr.msk.f32.vlgmr.msra.gmra.mrb[0].mxu0 %vm84_vm5, %v1488_v8 }
  0xfd   :  { %1576 = vmatpush3.msra.mxu0 %v237_v10  ;;  %1577 = vmatprep.mubr.msk.f32.mxu0 %vm1697_vm3, %v1694_v1 }
  0xfe   :  { %v159_v13 = vpop.permute.xlu1 %158  ;;  %1585 = vmatprep.subr.mxu0 %v1694_v1 }
  0xff   :  { %1571 = vmatpush3.msra.mxu1 %v159_v13 }
 0x100   :  { %1573 = vmatmul.mubr.msk.f32.vlgmr.msra.gmra.mrb[0].mxu1 %vm84_vm5, %v76_v11  ;;  %1578 = vmatmul.mubr.msk.f32.vlgmr.msra.gmra.mrb[2].mxu0 %vm84_vm5, %v1491_v12 }
 0x101   :  { %1580 = vmatprep.subr.mxu1 %v1694_v1  ;;  %1582 = vmatprep.mubr.msk.f32.mxu1 %vm1697_vm3, %v1694_v1 }
 0x102   :  { %1587 = vmatprep.mubr.msk.f32.mxu0 %vm1697_vm3, %v1694_v1 }
 0x10f   :  { %v317_v21 = vpop.permute.xlu1 %316 }
 0x1cf   :  { %v154_v14 = vpop.f32.mrb[0].mxu0 }
 0x1d0   :  { %v1569_v15 = vpop.f32.mrb[1].mxu0 }
 0x1d3   :  { %v230_v16 = vpop.f32.mrb[0].mxu1  ;;  %v308_v17 = vpop.f32.mrb[2].mxu0 }
 0x1d4   :  { %v231_v18 = vadd.f32 %v230_v16, %v154_v14  ;;  %v1574_v19 = vpop.f32.mrb[1].mxu1  ;;  %v1579_v20 = vpop.f32.mrb[3].mxu0 }
 0x1d5   :  { %v1510_v19 = vld [vmem:[%s1988_s10 + $0x10] sm:$0xff] }
 0x1d6   :  { %v312_v22 = vadd.f32 %v308_v17, %v231_v18  ;;  %v1247_v18 = vld [vmem:[%s1987_s12] sm:$0xff] }
 0x1d8   :  { %v319_v23 = vadd.f32 %v317_v21, %v312_v22 }
 0x1da   :  { %v320_v25 = vmax.f32 %v319_v23, 0.0 }
 0x1dc   :  { %v327_v26 = vmul.f32 %v1837_v24, %v320_v25  ;;  %v1249_v25 = vld [vmem:[%s1990_s13] sm:$0xff] }
 0x1de   :  { %329 = vrot.lane.b32.xlu0 %v327_v26, %s1695_s24  ;;  %v1231_v26 = vld [vmem:[%s1989_s11 + $0x8] sm:$0xff] }
 0x250   :  { %v330_v27 = vpop.permute.xlu0 %329 }
 0x251   :  { %333 = vst.msk [vmem:[#allocation3] sm:$0xff] %vm332_vm6, %v330_v27  ;;  %v1250_v27 = vld [vmem:[%s1990_s13 + $0x8] sm:$0xff] }
 0x258   :  { %v335_v28 = vld [vmem:[#allocation3] sm:$0xff] }
 0x259   :  { %415 = vrot.lane.b32.xlu0 %v335_v28, %s1701_s30  ;;  %339 = vrot.lane.b32.xlu1 %v335_v28, %s1700_s29 }
 0x25d   :  { %587 = vrot.lane.b32.xlu0 %v77_v6, %s1699_s28  ;;  %493 = vrot.lane.b32.xlu1 %v335_v28, %s1699_s28 }
 0x261   :  { %573 = vperm.xlu1 %1682, %v570_v29   ;;  %583 = vperm.xlu0 %1683, %v580_v30  }
 0x2cb   :  { %v416_v33 = vpop.permute.xlu0 %415  ;;  %v340_v34 = vpop.permute.xlu1 %339 }
 0x2cc   :  { %1581 = vmatpush3.msra.mxu1 %v340_v34  ;;  %1586 = vmatpush3.msra.mxu0 %v416_v33  ;;  %v1248_v34 = vld [vmem:[%s1987_s12 + $0x8] sm:$0xff] }
 0x2cd   :  { %1583 = vmatmul.mubr.msk.f32.vlgmr.msra.gmra.mrb[2].mxu1 %vm84_vm5, %v1494_v31  ;;  %1588 = vmatmul.mubr.msk.f32.vlgmr.msra.gmra.mrb[4].mxu0 %vm84_vm5, %v334_v32 }
 0x2ce   :  { %1595 = vmatprep.subr.mxu0 %v1694_v1  ;;  %1590 = vmatprep.subr.mxu1 %v1694_v1 }
 0x2cf   :  { %v588_v37 = vpop.permute.xlu0 %587  ;;  %v494_v38 = vpop.permute.xlu1 %493  ;;  %1592 = vmatprep.mubr.msk.f32.mxu1 %vm1697_vm3, %v1694_v1  ;;  %1597 = vmatprep.mubr.msk.f32.mxu0 %vm1697_vm3, %v1694_v1 }
 0x2d0   :  { %1591 = vmatpush3.msra.mxu1 %v494_v38  ;;  %1596 = vmatpush3.msra.mxu0 %v588_v37  ;;  %v1511_v37 = vld [vmem:[%s1988_s10 + $0x18] sm:$0xff]  ;;  %v960_v38 = vld [vmem:[%s1988_s10] sm:$0xff] }
 0x2d1   :  { %1593 = vmatmul.mubr.msk.f32.vlgmr.msra.gmra.mrb[4].mxu1 %vm84_vm5, %v1497_v35  ;;  %1598 = vmatmul.mubr.msk.f32.vlgmr.msra.gmra.mrb[6].mxu0 %vm84_vm5, %v579_v36 }
 0x2d2   :  { %1602 = vmatprep.mubr.msk.f32.mxu1 %vm84_vm5, %v1500_v57  ;;  %1619 = vmatprep.mubr.msk.f32.mxu0 %vm975_vm7, %v1510_v19 }
 0x2e0   :  { %v584_v44 = vpop.permute.xlu0 %583  ;;  %v574_v50 = vpop.permute.xlu1 %573 }
 0x3a0   :  { %v411_v39 = vpop.f32.mrb[2].mxu1  ;;  %v487_v40 = vpop.f32.mrb[4].mxu0 }
 0x3a1   :  { %v488_v41 = vadd.f32 %v487_v40, %v411_v39  ;;  %v1584_v42 = vpop.f32.mrb[3].mxu1  ;;  %v1589_v43 = vpop.f32.mrb[5].mxu0  ;;  %v961_v40 = vld [vmem:[%s1988_s10 + $0x8] sm:$0xff] }
 0x3a2   :  { %v1517_v42 = vld [vmem:[%s1988_s10 + $0x28] sm:$0xff] }
 0x3a4   :  { %v565_v45 = vpop.f32.mrb[4].mxu1  ;;  %v659_v46 = vpop.f32.mrb[6].mxu0 }
 0x3a5   :  { %v569_v47 = vadd.f32 %v565_v45, %v488_v41  ;;  %v1594_v48 = vpop.f32.mrb[5].mxu1  ;;  %v1599_v49 = vpop.f32.mrb[7].mxu0  ;;  %v660_v52 = vadd.f32 %v659_v46, %v584_v44  ;;  %v1516_v41 = vld [vmem:[%s1988_s10 + $0x20] sm:$0xff] }
 0x3a7   :  { %v576_v51 = vadd.f32 %v574_v50, %v569_v47 }
 0x3a9   :  { %v577_v53 = vmax.f32 %v576_v51, 0.0 }
 0x3ab   :  { %v663_v54 = vadd.f32 %v660_v52, %v577_v53 }
 0x3ad   :  { %v664_v55 = vmax.f32 %v663_v54, 0.0 }
 0x3af   :  { %v665_v56 = vmul.f32 %v1837_v24, %v664_v55  ;;  %v1702_v55 = vmov 0.0|0.0  }
 0x3b1   :  { %667 = vrot.lane.b32.xlu1 %v665_v56, %s1695_s24  ;;  %v1350_v56 = vld [vmem:[%s1991_s14] sm:$0xff] }
 0x423   :  { %v668_v58 = vpop.permute.xlu1 %667 }
 0x424   :  { %670 = vst.msk [vmem:[#allocation2] sm:$0xff] %vm332_vm6, %v668_v58 }
 0x42b   :  { %v673_v59 = vld [vmem:[#allocation2] sm:$0xff] }
 0x42c   :  { %846 = vrot.lane.b32.xlu0 %v673_v59, %s1699_s28  ;;  %678 = vrot.lane.b32.xlu1 %v673_v59, %s1701_s30 }
 0x430   :  { %941 = vperm.xlu0 %1683, %v933_v60   ;;  %936 = vperm.xlu1 %1682, %v932_v61  }
 0x49e   :  { %v679_v62 = vpop.permute.xlu1 %678  ;;  %v847_v2 = vpop.permute.xlu0 %846 }
 0x49f   :  { %1600 = vmatprep.subr.mxu1 %v679_v62 }
 0x4a0   :  { %1601 = vmatpush3.msra.mxu1 %v679_v62 }
 0x4a1   :  { %1603 = vmatmul.mubr.msk.f32.vlgmr.msra.gmra.mrb[6].mxu1 %vm84_vm5, %v1501_v63  ;;  %1605 = vmatprep.subr.mxu1 %v673_v59 }
 0x4a2   :  { %1606 = vmatpush3.msra.mxu1 %v673_v59  ;;  %1607 = vmatprep.mubr.msk.f32.mxu1 %vm84_vm5, %v671_v0 }
 0x4a3   :  { %1610 = vmatprep.subr.mxu1 %v847_v2 }
 0x4a9   :  { %1608 = vmatmul.mubr.msk.f32.vlgmr.msra.gmra.mrb[6].mxu1 %vm84_vm5, %v672_v3 }
 0x4aa   :  { %1611 = vmatpush3.msra.mxu1 %v847_v2  ;;  %1612 = vmatprep.mubr.msk.f32.mxu1 %vm84_vm5, %v1506_v4 }
 0x4af   :  { %v942_v6 = vpop.permute.xlu0 %941  ;;  %v937_v8 = vpop.permute.xlu1 %936 }
 0x4b1   :  { %1613 = vmatmul.mubr.msk.f32.vlgmr.msra.gmra.mrb[6].mxu1 %vm84_vm5, %v1507_v5 }
 0x4b2   :  { %1638 = vmatprep.mubr.msk.f32.mxu1 %vm84_vm5, %v1247_v18 }
 0x584   :  { %v1614_v7 = vpop.f32.mrb[6].mxu1 }
 0x585   :  { %v945_v9 = vadd.f32 %v1614_v7, %v942_v6  ;;  %v921_v10 = vpop.f32.mrb[7].mxu1 }
 0x586   :  { %v944_v11 = vadd.f32 %v937_v8, %v921_v10  ;;  %v1522_v8 = vld [vmem:[%s1992_s15] ss:$0 sm:$0xff] }
 0x587   :  { %v947_v12 = vmax.f32 %v945_v9, 0.0 }
 0x588   :  { %v946_v13 = vmax.f32 %v944_v11, 0.0 }
 0x589   :  { %v949_v14 = vmul.f32 %v1837_v24, %v947_v12 }
 0x58a   :  { %v948_v15 = vmul.f32 %v1837_v24, %v946_v13  ;;  %v1230_v24 = vld [vmem:[%s1989_s11] sm:$0xff] }
 0x58b   :  { %954 = vrot.lane.b32.xlu0 %v949_v14, %s1695_s24 }
 0x58c   :  { %952 = vrot.lane.b32.xlu1 %v948_v15, %s1695_s24 }
 0x5fd   :  { %v955_v16 = vpop.permute.xlu0 %954 }
 0x5fe   :  { %959 = vst.msk [vmem:[#allocation3 + $0x8] sm:$0xff] %vm332_vm6, %v955_v16  ;;  %v953_v17 = vpop.permute.xlu1 %952 }
 0x5ff   :  { %958 = vst.msk [vmem:[#allocation3] sm:$0xff] %vm332_vm6, %v953_v17 }
 0x605   :  { %v963_v20 = vld [vmem:[#allocation3 + $0x8] sm:$0xff] }
 0x606   :  { %v962_v21 = vld [vmem:[#allocation3] sm:$0xff] }
 0x607   :  { %v1689_v22 = vpack.i.bf16 %v963_v20, %v962_v21  ;;  %v1652_v23 = vpack.c.bf16 %v963_v20, %v962_v21 }
 0x609   :  { %1690 = vrot.lane.b32.xlu0 %v1689_v22, %s1699_s28  ;;  %1685 = vrot.lane.b32.xlu1 %v1689_v22, %s1701_s30 }
 0x60d   :  { %1234 = vperm.xlu0 %1683, %v1230_v24   ;;  %1262 = vrot.lane.b32.xlu1 %v673_v59, %s1699_s28 }
 0x611   :  { %1253 = vperm.xlu0 %1683, %v1249_v25   ;;  %1239 = vperm.xlu1 %1682, %v1231_v26  }
 0x615   :  { %1258 = vperm.xlu1 %1682, %v1250_v27  }
 0x67b   :  { %v1686_v28 = vpop.permute.xlu1 %1685  ;;  %v1691_v31 = vpop.permute.xlu0 %1690 }
 0x67c   :  { %v1688_v29 = vunpack.i.h.bf16 %v1686_v28  ;;  %v1687_v30 = vunpack.i.l.bf16 %v1686_v28  ;;  %v1693_v35 = vunpack.i.h.bf16 %v1691_v31  ;;  %v1692_v36 = vunpack.i.l.bf16 %v1691_v31 }
 0x67e   :  { %v1648_v32 = vpack.c.bf16 %v1688_v29, %v1687_v30  ;;  %v1656_v39 = vpack.c.bf16 %v1693_v35, %v1692_v36 }
 0x67f   :  { %v1263_v33 = vpop.permute.xlu1 %1262 }
 0x680   :  { %1649 = vmatprep.subr.bf16.mxu0 %v1648_v32  ;;  %1636 = vmatprep.subr.mxu1 %v1263_v33 }
 0x681   :  { %1651 = vmatpush3.bf16.msra.mxu0 %v1648_v32  ;;  %1637 = vmatpush3.msra.mxu1 %v1263_v33 }
 0x682   :  { %1653 = vmatprep.subr.bf16.mxu0 %v1652_v23  ;;  %1639 = vmatmul.mubr.msk.f32.vlgmr.msra.gmra.mrb[8].mxu1 %vm84_vm5, %v1248_v34 }
 0x684   :  { %1620 = vmatmul.mubr.msk.f32.vlgmr.msra.gmra.mrb[8].mxu0 %vm975_vm7, %v1511_v37 }
 0x685   :  { %1655 = vmatpush3.bf16.msra.mxu0 %v1652_v23  ;;  %1626 = vmatprep.mubr.msk.f32.mxu0 %vm975_vm7, %v960_v38 }
 0x686   :  { %1657 = vmatprep.subr.bf16.mxu0 %v1656_v39 }
 0x68c   :  { %1627 = vmatmul.mubr.msk.f32.vlgmr.msra.gmra.mrb[8].mxu0 %vm975_vm7, %v961_v40  ;;  %v1235_v46 = vpop.permute.xlu0 %1234 }
 0x68d   :  { %1659 = vmatpush3.bf16.msra.mxu0 %v1656_v39  ;;  %1633 = vmatprep.mubr.msk.f32.mxu0 %vm975_vm7, %v1516_v41 }
 0x68e   :  { %1660 = vmatprep.subr.bf16.mxu0 %v1702_v55 }
 0x690   :  { %v1240_v45 = vpop.permute.xlu1 %1239  ;;  %v1254_v52 = vpop.permute.xlu0 %1253 }
 0x694   :  { %1634 = vmatmul.mubr.msk.f32.vlgmr.msra.gmra.mrb[8].mxu0 %vm975_vm7, %v1517_v42  ;;  %v1259_v50 = vpop.permute.xlu1 %1258 }
 0x695   :  { %1645 = vmatprep.mubr.msk.f32.mxu0 %vm1697_vm3, %v1694_v1  ;;  %v1351_v1 = vld [vmem:[%s1991_s14 + $0x8] sm:$0xff] }
 0x696   :  { %v1661_v59 = vpack.c.bf16 %v1351_v1, %v1350_v56 }
 0x698   :  { %1662 = vmatpush3.bf16.msra.mxu0 %v1661_v59 }
 0x755   :  { %v1640_v43 = vpop.f32.mrb[8].mxu1 }
 0x756   :  { %v1337_v44 = vpop.f32.mrb[9].mxu1  ;;  %v1343_v53 = vadd.f32 %v1640_v43, %v1259_v50 }
 0x757   :  { %v1338_v57 = vadd.f32 %v1337_v44, %v1254_v52 }
 0x767   :  { %v1635_v47 = vpop.f32.mrb[8].mxu0 }
 0x768   :  { %v1243_v48 = vadd.f32 %v1635_v47, %v1240_v45  ;;  %v1219_v49 = vpop.f32.mrb[9].mxu0 }
 0x769   :  { %v1242_v51 = vadd.f32 %v1235_v46, %v1219_v49 }
 0x76a   :  { %v1245_v54 = vmax.f32 %v1243_v48, 0.0 }
 0x76b   :  { %v1244_v58 = vmax.f32 %v1242_v51, 0.0 }
 0x76c   :  { %v1347_v60 = vadd.f32 %v1343_v53, %v1245_v54 }
 0x76d   :  { %v1346_v61 = vadd.f32 %v1338_v57, %v1244_v58 }
 0x76e   :  { %v1349_v63 = vmax.f32 %v1347_v60, 0.0 }
 0x76f   :  { %v1348_v62 = vmax.f32 %v1346_v61, 0.0 }
 0x771   :  { %1361 = vrot.lane.b32.xlu1 %v1348_v62, %s1703_s8  ;;  %1355 = vrot.lane.b32.xlu0 %v1348_v62, %s1704_s5 }
 0x775   :  { %1363 = vrot.lane.b32.xlu1 %v1349_v63, %s1703_s8  ;;  %1357 = vrot.lane.b32.xlu0 %v1349_v63, %s1704_s5 }
 0x7e3   :  { %v1362_v0 = vpop.permute.xlu1 %1361  ;;  %v1356_v2 = vpop.permute.xlu0 %1355 }
 0x7e4   :  { %v1368_v3 = vsel %vm1367_vm8, %v1356_v2, %v1362_v0 }
 0x7e5   :  { %1376 = vxpose.xlu0.b32.start [1/2] (short) (narrow) %v1368_v3, 8 }
 0x7e7   :  { %v1364_v4 = vpop.permute.xlu1 %1363  ;;  %v1358_v5 = vpop.permute.xlu0 %1357 }
 0x7e8   :  { %v1369_v6 = vsel %vm1367_vm8, %v1358_v5, %v1364_v4 }
 0x7e9   :  { %1377 = vxpose.xlu0.b32.end [2/2] (short) (narrow) %v1369_v6, 8 }
 0x865   :  { %v1392_v7 = vpop.trf.xlu0 }
 0x866   :  { %1646 = vmatmul.mubr.msk.f32.vlgmr.msra.gmra.mrb[10].mxu0 %vm975_vm7, %v1392_v7 }
 0x939   :  { %v1477_v9 = vpop.f32.mrb[10].mxu0 }
 0x93a   :  { %v1478_v10 = vadd.f32 %v1522_v8, %v1477_v9  ;;  %v1647_v11 = vpop.f32.mrb[11].mxu0 }
 0x93c   :  { %1482 = vst.msk [vmem:[%s1993_s16] sm:$0x3] %vm1481_vm9, %v1478_v10 }

</bundles_post_ra>
